<compile_context>
chip_gen: v7x
topology: tpu7x:2x2x1
jax: 0.10.0
libtpu: 0.0.40
codegen_flags: <defaults>
</compile_context>

<pallas_src>
import functools

import numpy as np
import jax
import jax.numpy as jnp
from jax.experimental import pallas as pl
from jax.experimental.pallas import tpu as pltpu


# ---------------------------------------------------------------------------
# Fused patch-embed (+ bias-folded temporal pos-embed) Pallas kernel
# ---------------------------------------------------------------------------
def _patch_embed_kernel(x_ref, w_ref, pos_ref, o_ref, *, n_tokens):
    # x: (tm, K) bf16 | w: (K, D) bf16 | pos: (fpt, D) f32 (bias already folded)
    acc = jnp.dot(x_ref[...], w_ref[...], preferred_element_type=jnp.float32)
    pos = pos_ref[...]
    if n_tokens > 1:
        fpt, d = pos.shape
        # Broadcast each frame's pos row over that frame's n_tokens tokens.
        # n_tokens % 8 == 0 keeps the (fpt, n_tokens, d) view tile-aligned, so
        # this lowers to sublane-broadcast adds rather than a materialised copy.
        # TODO(synk): if a bundle dump ever shows a VMEM relayout here, switch
        # to unrolled stride-0 loads: pos_ref[pl.ds(f, n_tokens, stride=0)].
        acc = acc.reshape(fpt, n_tokens, d) + pos[:, None, :]
        o_ref[...] = acc.reshape(fpt * n_tokens, d).astype(o_ref.dtype)
    else:
        o_ref[...] = (acc + pos).astype(o_ref.dtype)


# Generation-portable VMEM budgeting (v7x: 64 MiB physical per TensorCore).
_VMEM_TILE_BUDGET = 40 * 1024 * 1024
_VMEM_LIMIT_CAP = 48 * 1024 * 1024


def _tile_vmem_bytes(tm, K, D, fpt):
    """Conservative VMEM footprint: double-buffered bf16 patches tile,
    double-buffered bf16 out tile, resident bf16 (K,D) weight (x2 buffers),
    double-buffered f32 pos rows."""
    return (2 * tm * K * 2) + (2 * tm * D * 2) + (2 * K * D * 2) + (2 * fpt * D * 4)


def _pick_frames_per_tile(num_frames, n_tokens, tm_target, K, D):
    """Largest frames-per-tile f (dividing num_frames) with tm = f*n_tokens <=
    tm_target, blocks (8/16,128)-aligned, and tile VMEM within budget.
    Prefers >= 2 grid steps (ideally an even count) so the 1-D parallel grid
    shards across v7x's 2 TensorCores.  Returns None if nothing fits."""
    total_rows = num_frames * n_tokens
    candidates = []
    for f in range(1, num_frames + 1):
        if num_frames % f:
            continue
        tm = f * n_tokens
        if tm > tm_target:
            break
        rows_ok = (tm % 16 == 0) or (tm == total_rows)   # bf16 lhs / bf16 out blocks
        pos_ok = (f % 8 == 0) or (f == num_frames)       # f32 pos block
        vmem_ok = _tile_vmem_bytes(tm, K, D, f) <= _VMEM_TILE_BUDGET
        if rows_ok and pos_ok and vmem_ok:
            candidates.append(f)
    if not candidates:
        return None

    def n_steps(f):
        return total_rows // (f * n_tokens)

    multi = [f for f in candidates if n_steps(f) >= 2]
    if multi:
        even = [f for f in multi if n_steps(f) % 2 == 0]
        pool = even if even else multi
        return max(pool)
    return max(candidates)


def patch_embed_pallas(patches, w, b, pos_rows, n_tokens, *, tm_target=512):
    """tokens[M, D] (bf16) = patches[M, K] @ w[K, D] + b[D] + repeat(pos_rows, n_tokens).

    patches/w are used as bf16 MXU operands; accumulation and the epilogue add
    stay in f32; the store narrows to bf16 (halves writeback bytes).  The bias
    is folded into the compact per-frame pos table (one row per frame).
    """
    M, K = patches.shape
    D = w.shape[1]
    assert M % n_tokens == 0
    num_frames = M // n_tokens

    # Fold bias into the (tiny) per-frame pos table -> single epilogue add.
    pos_rows = pos_rows.astype(jnp.float32) + b.reshape(1, D).astype(jnp.float32)

    if n_tokens > 1 and n_tokens % 8 != 0:
        # Token count not sublane-aligned: pre-expand pos to one row per token
        # in XLA and skip the in-kernel frame broadcast.
        pos_rows = jnp.repeat(pos_rows, n_tokens, axis=0)
        n_tokens = 1
        num_frames = M

    fpt = _pick_frames_per_tile(num_frames, n_tokens, tm_target, K, D)
    if fpt is None and n_tokens > 1:
        # No frame-aligned tile fits: fall back to per-token pos rows and a
        # plain 16-aligned row tile instead of one whole-array grid step.
        pos_rows = jnp.repeat(pos_rows, n_tokens, axis=0)
        n_tokens = 1
        num_frames = M
        fpt = _pick_frames_per_tile(num_frames, n_tokens, tm_target, K, D)
    if fpt is None:
        # TODO(synk): last-resort single full-array step (only hit for odd M).
        fpt = num_frames

    tm = fpt * n_tokens
    grid = (M // tm,)

    vmem_limit = int(min(_VMEM_LIMIT_CAP,
                         max(32 * 1024 * 1024, 1.5 * _tile_vmem_bytes(tm, K, D, fpt))))

    x_bf16 = patches.astype(jnp.bfloat16)
    w_bf16 = w.astype(jnp.bfloat16)

    kernel = functools.partial(_patch_embed_kernel, n_tokens=n_tokens)
    return pl.pallas_call(
        kernel,
        out_shape=jax.ShapeDtypeStruct((M, D), jnp.bfloat16),
        grid_spec=pltpu.PrefetchScalarGridSpec(
            num_scalar_prefetch=0,
            grid=grid,
            in_specs=[
                pl.BlockSpec((tm, K), lambda i: (i, 0)),    # patches tile
                pl.BlockSpec((K, D), lambda i: (0, 0)),     # resident weight
                pl.BlockSpec((fpt, D), lambda i: (i, 0)),   # per-frame pos rows (+bias)
            ],
            out_specs=pl.BlockSpec((tm, D), lambda i: (i, 0)),
        ),
        compiler_params=pltpu.CompilerParams(
            dimension_semantics=("parallel",),              # shards across TCs on v7x
            vmem_limit_bytes=vmem_limit,
        ),
        # TODO(synk): on v5e, sweep pipeline_mode=pl.Buffered(3) on the patches
        # in_spec if the input DMA tail is exposed after these changes.
    )(x_bf16, w_bf16, pos_rows)


# ---------------------------------------------------------------------------
# Patchify: single combined reshape/transpose/cast over the video tensor.
# ---------------------------------------------------------------------------
def patchify_video(x, patch_size):
    """[Ball, C, T, H, W] -> ([Ball*T*N, C*P*P] bf16 patch matrix, N)."""
    Ball, C, T, H, W = x.shape
    P = patch_size
    nh, nw = H // P, W // P
    x = x.astype(jnp.bfloat16)
    x = x.reshape(Ball, C, T, nh, P, nw, P)
    x = x.transpose(0, 2, 3, 5, 1, 4, 6)                    # [Ball, T, nh, nw, C, P, P]
    patches = x.reshape(Ball * T * nh * nw, C * P * P)
    return patches, nh * nw


# ---------------------------------------------------------------------------
# FrameAggregation forward
# ---------------------------------------------------------------------------
def get_1d_sincos_pos_embed(embed_dim, length):
    pos = np.arange(length, dtype=np.float64)
    omega = np.arange(embed_dim // 2, dtype=np.float64) / (embed_dim / 2.0)
    omega = 1.0 / (10000.0 ** omega)
    out = np.einsum("m,d->md", pos, omega)
    return np.concatenate([np.sin(out), np.cos(out)], axis=1)  # [length, D]


def frame_aggregation_forward(x, clip_indices, w_patch, b_patch, pos_embed,
                              patch_size, *, tm_target=512):
    """x: list[num_clips] of list[num_views] of [B, C, T_clip, H, W] arrays.

    Returns list[num_views] of [B, T*N, D] token arrays (bf16, pos-embed added
    per frame), matching the PyTorch FrameAggregation.forward semantics.
    """
    num_views = len(x[0])
    x = [jnp.concatenate(xi, axis=0) for xi in x]            # each [B*V, C, Tc, H, W]
    x = jnp.concatenate(x, axis=2)                           # [B*V, C, T, H, W]
    Ball, C, T, H, W = x.shape

    patches, N = patchify_video(x, patch_size)               # [F*N, K] bf16
    D = w_patch.shape[1]
    F = Ball * T
    B = Ball // num_views

    # Per-frame temporal pos embed, gathered with clip_indices (tiny: [F, D]).
    if pos_embed is not None and clip_indices is not None:
        pe = jnp.broadcast_to(pos_embed, (B,) + pos_embed.shape[1:])     # [B, maxF, D]
        gathered = [
            jnp.take_along_axis(pe, idx[:, :, None].astype(jnp.int32), axis=1)
            for idx in clip_indices
        ]                                                     # list of [B, Tc, D]
        pe = jnp.concatenate(gathered, axis=1)                # [B, T, D]
        pos_frames = jnp.tile(pe, (num_views, 1, 1)).reshape(F, D)
    else:
        pos_frames = jnp.zeros((F, D), jnp.float32)

    # One fused pallas_call for every view / clip / frame.
    tokens = patch_embed_pallas(patches, w_patch, b_patch, pos_frames, N,
                                tm_target=tm_target)          # [F*N, D] bf16
    outputs = tokens.reshape(Ball, T * N, D)
    return [outputs[i * B:(i + 1) * B] for i in range(num_views)]


# ---------------------------------------------------------------------------
# NumPy reference (mirrors the PyTorch semantics; same bf16 operand rounding)
# ---------------------------------------------------------------------------
def reference_forward_np(x, clip_indices, w_patch, b_patch, pos_embed, patch_size):
    num_views = len(x[0])
    xc = [np.concatenate([np.asarray(v) for v in xi], axis=0) for xi in x]
    xc = np.concatenate(xc, axis=2)
    Ball, C, T, H, W = xc.shape
    frames = xc.transpose(0, 2, 1, 3, 4).reshape(Ball * T, C, H, W)
    P = patch_size
    nh, nw = H // P, W // P
    N = nh * nw
    patches = frames.reshape(Ball * T, C, nh, P, nw, P).transpose(0, 2, 4, 1, 3, 5)
    patches = patches.reshape(Ball * T * N, C * P * P)
    # Match the kernel's bf16 operand rounding (accumulation stays f32 on the MXU).
    patches = np.asarray(jnp.asarray(patches).astype(jnp.bfloat16).astype(jnp.float32))
    w = np.asarray(jnp.asarray(w_patch).astype(jnp.bfloat16).astype(jnp.float32))
    toks = patches.astype(np.float64) @ w.astype(np.float64) + np.asarray(b_patch)
    D = w.shape[1]
    out = toks.reshape(Ball, T * N, D)
    B = Ball // num_views
    res = []
    for i in range(num_views):
        o = out[i * B:(i + 1) * B].copy()
        if pos_embed is not None and clip_indices is not None:
            pe = np.broadcast_to(np.asarray(pos_embed), (B,) + pos_embed.shape[1:])
            g = [np.take_along_axis(pe, np.asarray(idx)[:, :, None].astype(np.int64), axis=1)
                 for idx in clip_indices]
            pe_cat = np.concatenate(g, axis=1)                              # [B, T, D]
            pe_tok = np.repeat(pe_cat[:, :, None, :], N, axis=2).reshape(B, T * N, D)
            o = o + pe_tok
        res.append(o)
    return res


if __name__ == "__main__":
    # B=2, C=4, H=W=32, P=8 -> N=16 tokens/frame, K=256; D=128 (lane-dense);
    # 2 clips x 8 frames, 1 view -> 32 frames, 512 token rows.
    # Tile picker chooses tm=256 (16 frames/tile) -> grid=(2,) so both v7x TCs
    # get one step each.
    B, C, H, W = 2, 4, 32, 32
    P = 8
    D = 128
    num_clips, num_views, T_clip = 2, 1, 8
    max_frames = 32

    key = jax.random.PRNGKey(0)
    k_w, k_b, *k_clips = jax.random.split(key, 2 + num_clips * num_views)

    K = C * P * P
    w_patch = jax.random.normal(k_w, (K, D), dtype=jnp.float32) * 0.02
    b_patch = jax.random.normal(k_b, (D,), dtype=jnp.float32) * 0.02
    pos_embed = jnp.asarray(
        get_1d_sincos_pos_embed(D, max_frames), dtype=jnp.float32)[None]    # [1,maxF,D]

    # x: list[num_clips] of list[num_views] of [B, C, T_clip, H, W]
    x = []
    ki = 0
    for _ in range(num_clips):
        views = []
        for _ in range(num_views):
            views.append(jax.random.normal(
                k_clips[ki], (B, C, T_clip, H, W), dtype=jnp.float32))
            ki += 1
        x.append(views)

    # clip_indices: one [B, T_clip] frame-index tensor per clip
    clip_indices = [
        jnp.tile(jnp.arange(c * T_clip, (c + 1) * T_clip, dtype=jnp.int32)[None],
                 (B, 1))
        for c in range(num_clips)
    ]

    outs = frame_aggregation_forward(x, clip_indices, w_patch, b_patch,
                                     pos_embed, P)
    outs = [jax.block_until_ready(o) for o in outs]

    refs = reference_forward_np(x, clip_indices, w_patch, b_patch, pos_embed, P)
    for o, r in zip(outs, refs):
        assert o.shape == r.shape, (o.shape, r.shape)
        assert o.dtype == jnp.bfloat16
        # bf16 output rounding: relative error ~2^-8 on values of magnitude <~2.
        np.testing.assert_allclose(np.asarray(o, dtype=np.float64), r,
                                   rtol=2e-2, atol=2e-2)

    print("KERNEL_OK")
</pallas_src>

<mosaic_0001>
module attributes {stable_mosaic.version = 11 : i64} {
  func.func @_patch_embed_kernel(%arg0: i32, %arg1: memref<256x256xbf16, #tpu.memory_space<vmem>>, %arg2: memref<256x128xbf16, #tpu.memory_space<vmem>>, %arg3: memref<16x128xf32, #tpu.memory_space<vmem>>, %arg4: memref<256x128xbf16, #tpu.memory_space<vmem>>) attributes {dimension_semantics = [#tpu.dimension_semantics<parallel>], iteration_bounds = array<i64: 2>, scalar_prefetch = 0 : i64, scratch_operands = 0 : i64, tpu.core_type = #tpu.core_type<tc>, window_params = [{transform_indices = @transform_0, window_bounds = array<i64: 256, 256>}, {pipeline_mode = #tpu.pipeline_mode<synchronous>, transform_indices = @transform_1, window_bounds = array<i64: 256, 128>}, {transform_indices = @transform_2, window_bounds = array<i64: 16, 128>}, {transform_indices = @transform_3, window_bounds = array<i64: 256, 128>}]} {
    %c0 = arith.constant 0 : index
    %c0_0 = arith.constant 0 : index
    %0 = vector.load %arg1[%c0, %c0_0] : memref<256x256xbf16, #tpu.memory_space<vmem>>, vector<256x256xbf16>
    %c0_1 = arith.constant 0 : index
    %c0_2 = arith.constant 0 : index
    %1 = vector.load %arg2[%c0_1, %c0_2] : memref<256x128xbf16, #tpu.memory_space<vmem>>, vector<256x128xbf16>
    %cst = arith.constant dense<0.000000e+00> : vector<256x128xf32>
    %2 = tpu.matmul %0, %1, %cst {dimension_numbers = #tpu.dot_dimension_numbers<[1], [0], [0], [1], [0, 0, 1, 1], [], []>} : vector<256x256xbf16>, vector<256x128xbf16>, vector<256x128xf32> -> vector<256x128xf32>
    %c0_3 = arith.constant 0 : index
    %c0_4 = arith.constant 0 : index
    %3 = vector.load %arg3[%c0_3, %c0_4] : memref<16x128xf32, #tpu.memory_space<vmem>>, vector<16x128xf32>
    %4 = vector.shape_cast %2 : vector<256x128xf32> to vector<16x16x128xf32>
    %5 = vector.shape_cast %3 : vector<16x128xf32> to vector<16x1x128xf32>
    %6 = vector.broadcast %5 : vector<16x1x128xf32> to vector<16x16x128xf32>
    %7 = arith.addf %4, %6 : vector<16x16x128xf32>
    %8 = vector.shape_cast %7 : vector<16x16x128xf32> to vector<256x128xf32>
    %9 = arith.truncf %8 : vector<256x128xf32> to vector<256x128xbf16>
    %c0_5 = arith.constant 0 : index
    %c0_6 = arith.constant 0 : index
    %10 = vector.load %arg4[%c0_5, %c0_6] : memref<256x128xbf16, #tpu.memory_space<vmem>>, vector<256x128xbf16>
    tpu.vector_store %arg4[%c0_5, %c0_6], %9 {strides = array<i32>} : memref<256x128xbf16, #tpu.memory_space<vmem>>, vector<256x128xbf16>,
    return
  }
  func.func @transform_0(%arg0: i32) -> (i32, i32) {
    %c0_i32 = arith.constant 0 : i32
    %c0_i32_0 = arith.constant 0 : i32
    return %arg0, %c0_i32 : i32, i32
  }
  func.func @transform_1(%arg0: i32) -> (i32, i32) {
    %c0_i32 = arith.constant 0 : i32
    %c0_i32_0 = arith.constant 0 : i32
    %c0_i32_1 = arith.constant 0 : i32
    return %c0_i32, %c0_i32_0 : i32, i32
  }
  func.func @transform_2(%arg0: i32) -> (i32, i32) {
    %c0_i32 = arith.constant 0 : i32
    %c0_i32_0 = arith.constant 0 : i32
    return %arg0, %c0_i32 : i32, i32
  }
  func.func @transform_3(%arg0: i32) -> (i32, i32) {
    %c0_i32 = arith.constant 0 : i32
    %c0_i32_0 = arith.constant 0 : i32
    return %arg0, %c0_i32 : i32, i32
  }
}

</mosaic_0001>

<bundles_post_ra>
// kernel: tpu_custom_call.1
= control target key start
LH: loop header
LB: loop body
LE: loop exit
PB: predicated region body
PF: predicated region fallthrough
CT: control target
= control target key end

     0   :  { %8 = vsyncpa [#allocation3], 0  ;;  %s2291_s0 = inlined_call_operand.hbm [shape: bf16[512,256], index: 0, kind: input, shape index: {}]   ;;  %s2292_s1 = inlined_call_operand.hbm [shape: bf16[256,128], index: 1, kind: input, shape index: {}]   ;;  %s2293_s2 = inlined_call_operand.hbm [shape: f32[32,128], index: 2, kind: input, shape index: {}]   ;;  %s2294_s3 = inlined_call_operand.hbm [shape: bf16[512,128], index: 3, kind: output, shape index: {}]  }
   0x1   :  { %10 = vsyncpa [#allocation3 + $0x1], 0 }
   0x2   :  { %11 = vsyncpa [#allocation6], 0 }
   0x3   :  { %12 = vsyncpa [#allocation4], 0 }
   0x4   :  { %14 = vsyncpa [#allocation4 + $0x1], 0  ;;  %s1908_s12 = smov 0   ;;  %s1910_s13 = smov 0  }
   0x5   :  { %s1912_s14 = smov 0   ;;  %s1914_s15 = smov 0  }
   0x6 LB: > { %s1929_s16 = sadd.s32 1, %s1875_s15   ;;  %s27_s17 = sadd.s32 1, %s1871_s14  ;;  %s1875_s15 = sphi %s1914_s15, %s2317_s15   ;;  %s1871_s14 = sphi %s1912_s14, %s2316_s14   ;;  %s1867_s13 = sphi %s1910_s13, %s2315_s13   ;;  %s1863_s12 = sphi %s1908_s12, %s2314_s12  }
   0x7   : > { %s24_s18 = ssub.s32 %s1875_s15, %s1929_s16  ;;  %p34_p0 = scmp.ne.s32.totalorder %s1871_s14, %s1867_s13 }
   0x8   : > { %p25_p1 = scmp.eq.s32.totalorder %s24_s18, 0  ;;  %p35_p2 = scmp.eq.s32.totalorder %s1875_s15, 0 }
   0x9   : > { %p1604_p4 = scmp.lt.s32.totalorder %s1875_s15, 2  ;;  %s150_s20 = sand.u32 1, %s1875_s15  }
   0xa   : > { %s1940_s19 = scalar_select %p25_p1, %s1871_s14, %s27_s17  }
   0xb   : > { %p36_p5 = por %p35_p2, %p34_p0  ;;  %s152_s21 = sand.u32 1, %s1871_s14  }
   0xc   : > { %s1222_s22 = sshll.u32 %s152_s21, 8  ;;  %s1320_s23 = sshll.u32 %s1875_s15, 12 }
   0xd   : > { %s1953_s26 = scalar_lea.hbm %s2291_s0, %s1320_s23  ;;  %s154_s27 = scalar_lea.vmem [#allocation2], %s1222_s22 }
   0xe   : > { %s162_s28 = sshll.u32 %s154_s27, 4  ;;  %p1955_p6 = pnand %p1604_p4, %p36_p5  ;;  %s1959_s28 = int_to_ptr.vmem [resolvable:$true] %s162_s28 }
   0xf   : > { %s1961_s30 = scalar_lea.sflag [#allocation3], %s150_s20  ;;  %s1713_s4 = scalar_lea.hbm %s1953_s26, 4096 }
  0x10   : > { %p1714_p7 = scmp.ne.s32.totalorder %s1953_s26, %s1713_s4  ;;  %p1715_p8 = pneg %p1955_p6 }
  0x11   : > { %s1718_s7 = scalar_lea.hbm %s2291_s0, 8192  ;;  %p1719_p11 = scmp.lt.u32.totalorder %s1953_s26, %s2291_s0 }
  0x12   : > { %p1716_p9 = pnand %p1715_p8, %p1714_p7  ;;  %p1720_p12 = scmp.lt.u32.totalorder %s1718_s7, %s1713_s4 }
  0x13   : > { %p1722_p1 = scmp.lt.u32.totalorder %s1713_s4, %s1953_s26 }
  0x14   : > { %p1717_p10 = pneg %p1716_p9  ;;  %p1721_p13 = por %p1720_p12, %p1719_p11 }
  0x16   : > { %p1723_p2 = por %p1722_p1, %p1721_p13 }
  0x18   : > { %p1724_p4 = pnand %p1723_p2, %p1717_p10 }
  0x1a   : > { %1727 = shalt.err (!%p1724_p4)
}
  0x1b   : > { %s1728_s10 = scalar_lea.vmem %s1959_s28, 4096  ;;  %s1877_s11 = smov [#allocation2]  }
  0x1c   : > { %p1729_p5 = scmp.ne.s32.totalorder %s1959_s28, %s1728_s10  ;;  %s1733_s17 = sshll.u32 %s1877_s11, 4  ;;  %s1734_s17 = int_to_ptr.vmem [resolvable:$false] %s1733_s17 }
  0x1d   : > { %s1735_s18 = scalar_lea.vmem %s1734_s17, 8192  ;;  %p1736_p3 = scmp.lt.s32.totalorder %s1959_s28, %s1734_s17 }
  0x1e   : > { %p1731_p7 = pnand %p1729_p5, %p1715_p8  ;;  %p1737_p11 = scmp.lt.s32.totalorder %s1735_s18, %s1728_s10 }
  0x20   : > { %p1732_p9 = pneg %p1731_p7  ;;  %p1738_p12 = por %p1737_p11, %p1736_p3 }
  0x22   : > { %p1739_p13 = pnand %p1738_p12, %p1732_p9 }
  0x24   : > { %1742 = shalt.err (!%p1739_p13)
}
  0x25   : > { %s2295_s20 = smov 128   ;;  %s1879_s22 = smov 8  }
  0x26   : > { %1595 = dma.hbm_to_vmem [thread:$0]  (!%p1955_p6), %s1953_s26, 4096, %s1959_s28, %s1961_s30, %s2295_s20, %s2295_s20, %s1879_s22  }
  0x27   : > { %s1226_s23 = sshll.u32 %s152_s21, 4  ;;  %s1995_s27 = sadd.s32 4294967295, %s1875_s15  }
  0x28   : > { %s176_s24 = scalar_lea.vmem [#allocation7], %s1226_s23  ;;  %s1218_s4 = sadd.s32 4294967294, %s1875_s15  }
  0x29   : > { %s183_s25 = sshll.u32 %s176_s24, 4  ;;  %p40_p3 = scmp.ne.s32.totalorder %s1867_s13, %s1863_s12  ;;  %s2030_s25 = int_to_ptr.vmem [resolvable:$true] %s183_s25 }
  0x2a   : > { %p2296_p10 = scmp.eq.s32.totalorder %s1995_s27, 0  ;;  %p111_p1 = scmp.eq.s32.totalorder %s1995_s27, 1 }
  0x2b   : > { %p117_p2 = scmp.eq.s32.totalorder %s1218_s4, 1  ;;  %p1219_p4 = scmp.ge.s32.totalorder %s1875_s15, 1 }
  0x2c   : > { %p2005_p5 = por %p2296_p10, %p40_p3  ;;  %p2012_p7 = por %p111_p1, %p34_p0 }
  0x2d   : > { %p2016_p9 = por %p117_p2, %p40_p3  ;;  %p124_p11 = scmp.lt.s32.totalorder %s1875_s15, 3 }
  0x2e   : > { %s2301_s26 = scalar_select %p2005_p5, 1, 0 }
  0x2f   : > { %s2302_s21 = scalar_select %p2012_p7, 1, 0 }
  0x30   : > { %s2303_s28 = scalar_select %p2016_p9, 1, 0 }
  0x31   : > { %p2021_p12 = pnand %p1219_p4, %p124_p11  ;;  %s1880_s6 = smov [#allocation5]  }
  0x32   : > { %s136_s7 = sshll.u32 %s1880_s6, 4  ;;  %s1321_s8 = sshll.u32 %s1875_s15, 8  ;;  %s2025_s7 = int_to_ptr.vmem [resolvable:$true] %s136_s7 }
  0x33   : > { %s2304_s5 = scalar_select %p2021_p12, 1, 0 }
  0x34   : > { %p1588_p13 = pneg %p2021_p12  ;;  %s2041_s17 = scalar_lea.hbm %s2293_s2, %s1321_s8 }
  0x35   : > { %s1743_s18 = scalar_lea.hbm %s2041_s17, 256  ;;  %s1748_s4 = scalar_lea.hbm %s2293_s2, 512 }
  0x36   : > { %p2034_p0 = pnand %p1588_p13, %p2296_p10  ;;  %p1744_p3 = scmp.ne.s32.totalorder %s2041_s17, %s1743_s18 }
  0x37   : > { %p1749_p4 = scmp.lt.u32.totalorder %s2041_s17, %s2293_s2  ;;  %p1750_p11 = scmp.lt.u32.totalorder %s1748_s4, %s1743_s18 }
  0x38   : > { %p1746_p1 = pnand %p1744_p3, %p1715_p8  ;;  %p1752_p10 = scmp.lt.u32.totalorder %s1743_s18, %s2041_s17 }
  0x39   : > { %p1751_p13 = por %p1750_p11, %p1749_p4 }
  0x3a   : > { %p1747_p2 = pneg %p1746_p1 }
  0x3b   : > { %p1753_p9 = por %p1752_p10, %p1751_p13 }
  0x3d   : > { %p1754_p7 = pnand %p1753_p9, %p1747_p2 }
  0x3f   : > { %1757 = shalt.err (!%p1754_p7)
}
  0x40   : > { %s1758_s8 = scalar_lea.vmem %s2030_s25, 256  ;;  %s1881_s10 = smov [#allocation7]  }
  0x41   : > { %p1759_p3 = scmp.ne.s32.totalorder %s2030_s25, %s1758_s8  ;;  %s1763_s11 = sshll.u32 %s1881_s10, 4  ;;  %s1764_s11 = int_to_ptr.vmem [resolvable:$false] %s1763_s11 }
  0x42   : > { %s1765_s20 = scalar_lea.vmem %s1764_s11, 512  ;;  %p1766_p12 = scmp.lt.s32.totalorder %s2030_s25, %s1764_s11 }
  0x43   : > { %p1761_p1 = pnand %p1759_p3, %p1715_p8  ;;  %p1767_p4 = scmp.lt.s32.totalorder %s1765_s20, %s1758_s8 }
  0x45   : > { %p1762_p5 = pneg %p1761_p1  ;;  %p1768_p11 = por %p1767_p4, %p1766_p12 }
  0x47   : > { %p1769_p10 = pnand %p1768_p11, %p1762_p5 }
  0x49   : > { %1772 = shalt.err (!%p1769_p10)
}
  0x4a   : > { %s2306_s18 = smov 128   ;;  %s1773_s4 = scalar_lea.hbm %s2292_s1, 2048 }
  0x4b   : > { %1598 = dma.hbm_to_vmem [thread:$0]  (!%p1955_p6), %s2041_s17, 256, %s2030_s25, %s1961_s30, %s2306_s18, %s2306_s18, %s1879_s22  }
  0x4c   : > { %p1774_p8 = scmp.ne.s32.totalorder %s2292_s1, %s1773_s4  ;;  %p1775_p5 = pneg %p2034_p0 }
  0x4d   : > { %p1780_p12 = scmp.lt.u32.totalorder %s1773_s4, %s2292_s1 }
  0x4e   : > { %p1776_p7 = pnand %p1775_p5, %p1774_p8 }
  0x50   : > { %p1777_p9 = pneg %p1776_p7 }
  0x52   : > { %p1782_p2 = pnand %p1780_p12, %p1777_p9 }
  0x54   : > { %1785 = shalt.err (!%p1782_p2)
}
  0x55   : > { %s1786_s30 = scalar_lea.vmem %s2025_s7, 2048  ;;  %p1794_p1 = scmp.lt.s32.totalorder %s2025_s7, %s2025_s7 }
  0x56   : > { %p1787_p6 = scmp.ne.s32.totalorder %s2025_s7, %s1786_s30  ;;  %p1795_p4 = scmp.lt.s32.totalorder %s1786_s30, %s1786_s30 }
  0x58   : > { %p1789_p13 = pnand %p1787_p6, %p1775_p5  ;;  %p1796_p11 = por %p1795_p4, %p1794_p1 }
  0x5a   : > { %p1790_p3 = pneg %p1789_p13 }
  0x5c   : > { %p1797_p10 = pnand %p1796_p11, %p1790_p3 }
  0x5e   : > { %1800 = shalt.err (!%p1797_p10)
}
  0x5f   : > { %s1882_s22 = smov 64   ;;  %s1883_s25 = smov 4  }
  0x60   : > { %1591 = dma.hbm_to_vmem [thread:$0]  (!%p2034_p0), %s2292_s1, 2048, %s2025_s7, [#allocation6], %s1882_s22, %s1882_s22, %s1883_s25  }
  0x61   : > { %p2307_p8 = scmp.ne.s32.totalorder %s2304_s5, 0 }
  0x62   : > { %s197_s20 = sand.u32 (!%p2307_p8), 1, %s1995_s27   ;;  %s2095_s18 = sand.u32 (!%p2307_p8), 1, %s1867_s13  }
  0x63   : > { %195 = sbr.rel (%p2307_p8) target bundleno = 438 (0x1b6), region = 32  ;;  %s1230_s23 = sshll.u32 (!%p2307_p8), %s2095_s18, 8 }
  0x64   : > { %s198_s24 = scalar_lea.sflag (!%p2307_p8), [#allocation3], %s197_s20  ;;  %s2098_s4 = scalar_lea.vmem (!%p2307_p8), [#allocation2], %s1230_s23 }
  0x65   : > { %p2308_p5 = scmp.ne.s32.totalorder (!%p2307_p8), %s2301_s26, 0 }
  0x6a   : > { %1846 = dma.done.wait (%p2308_p5), %s198_s24, 4096  }
  0x6b   : > { %1848 = vsyncadd (%p2308_p5), %s198_s24, 4294963200  ;;  %p2309_p0 = scmp.eq.s32.totalorder %s1995_s27, 0 }
  0x6d   : > { %1850 = dma.done.wait (%p2309_p0), [#allocation6], 2048   ;;  %p2310_p7 = pmov %p2309_p0 }
  0x6e   : > { %s1232_s5 = sshll.u32 %s2095_s18, 4 }
  0x6f   : > { %1852 = vsyncadd (%p2310_p7), [#allocation6], 4294965248  ;;  %s2109_s7 = scalar_lea.vmem [#allocation7], %s1232_s5 }
  0x70   : > { %1854 = dma.done.wait (%p2308_p5), %s198_s24, 256  }
  0x71   : > { %1856 = vsyncadd (%p2308_p5), %s198_s24, 4294967040  ;;  %v1647_v0 = vld [vmem:[#allocation5 + $0x40] sm:$0xff]   ;;  %v1649_v2 = vld [vmem:[#allocation5 + $0x48] sm:$0xff]   ;;  %v1884_v48 = vmov 1966171168   ;;  %v735_v50 = vlaneseq  ;;  %s1233_s26 = sshll.u32 %s2095_s18, 7 }
  0x72   : > { %v1648_v1 = vld [vmem:[#allocation5] sm:$0xff]   ;;  %1450 = vmatprep.subr.bf16.mxu0 %v1647_v0  ;;  %1562 = vmatprep.subr.bf16.mxu1 %v1647_v0  ;;  %v1650_v3 = vld [vmem:[#allocation5 + $0x8] sm:$0xff]   ;;  %v1651_v4 = vld [vmem:[#allocation5 + $0x50] sm:$0xff]   ;;  %v733_v49 = vunpack.c.l.s4 %v1884_v48  ;;  %s2172_s9 = scalar_lea.vmem [#allocation8], %s1233_s26  ;;  %s1354_s6 = sshll.u32 %s1995_s27, 11 }
  0x73   : > { %1451 = vmatpush3.bf16.msra.mxu0 %v1648_v1  ;;  %1570 = vmatpush3.bf16.msra.mxu1 %v1648_v1  ;;  %v1652_v5 = vld [vmem:[#allocation5 + $0x10] sm:$0xff]   ;;  %v1653_v6 = vld [vmem:[#allocation5 + $0x58] sm:$0xff]   ;;  %v1655_v8 = vld [vmem:[#allocation5 + $0x60] sm:$0xff]   ;;  %v736_v52 = vshrl.u32 %v735_v50, 7  ;;  %s1115_s10 = sshll.u32 %s2172_s9, 4  ;;  %s2243_s30 = scalar_lea.hbm %s2294_s3, %s1354_s6  ;;  %s2245_s10 = int_to_ptr.vmem [resolvable:$true] %s1115_s10 }
  0x74   : > { %1452 = vmatprep.subr.bf16.mxu0 %v1649_v2  ;;  %1563 = vmatprep.subr.bf16.mxu1 %v1649_v2  ;;  %v1654_v7 = vld [vmem:[#allocation5 + $0x18] sm:$0xff]   ;;  %v1656_v9 = vld [vmem:[#allocation5 + $0x20] sm:$0xff]   ;;  %v1657_v10 = vld [vmem:[#allocation5 + $0x68] sm:$0xff]   ;;  %v734_v51 = vunpack.c.0.s8 %v733_v49  ;;  %s1102_s27 = scalar_lea.sflag [#allocation4], %s2095_s18  ;;  %s1801_s22 = scalar_lea.vmem %s2245_s10, 2048 }
  0x75   : > { %v1665_v11 = vld [vmem:[%s2098_s4 + $0x4] ss:$8 sps:$4 sm:$0xff]   ;;  %v1659_v14 = vld [vmem:[#allocation5 + $0x70] sm:$0xff]   ;;  %v1661_v16 = vld [vmem:[#allocation5 + $0x78] sm:$0xff]   ;;  %v2160_v59 = vsub.s32 0, %v736_v52  ;;  %p1802_p9 = scmp.ne.s32.totalorder %s2245_s10, %s1801_s22  ;;  %p2311_p12 = scmp.ne.s32.totalorder %s2302_s21, 0 }
  0x76   : > { %v1668_v12 = vld [vmem:[%s2098_s4 + $0x84] ss:$8 sps:$4 sm:$0xff]   ;;  %598 = vmatprep.mubr.bf16.mxu0 %v1665_v11  ;;  %v1660_v15 = vld [vmem:[#allocation5 + $0x30] sm:$0xff]   ;;  %v1662_v17 = vld [vmem:[#allocation5 + $0x38] sm:$0xff]   ;;  %v2147_v53 = vsub.s32 %v734_v51, %v736_v52  ;;  %s1885_s25 = smov [#allocation8]  }
  0x77   : > { %1453 = vmatpush3.bf16.msra.mxu0 %v1650_v3  ;;  %1571 = vmatpush3.bf16.msra.mxu1 %v1650_v3  ;;  %v1658_v13 = vld [vmem:[#allocation5 + $0x28] sm:$0xff]   ;;  %v1669_v20 = vld [vmem:[%s2098_s4 + $0x14] ss:$8 sps:$4 sm:$0xff]   ;;  %v1673_v22 = vld [vmem:[%s2098_s4 + $0x10] ss:$8 sps:$4 sm:$0xff]   ;;  %p1803_p2 = pnand %p1802_p9, %p2311_p12  ;;  %s1805_s17 = sshll.u32 %s1885_s25, 4  ;;  %s1806_s17 = int_to_ptr.vmem [resolvable:$false] %s1805_s17 }
  0x78   : > { %1454 = vmatprep.subr.bf16.mxu0 %v1651_v4  ;;  %1564 = vmatprep.subr.bf16.mxu1 %v1651_v4  ;;  %v1663_v18 = vld [vmem:[%s2098_s4] ss:$8 sps:$4 sm:$0xff]   ;;  %v1671_v21 = vld [vmem:[%s2098_s4 + $0x94] ss:$8 sps:$4 sm:$0xff]   ;;  %v1674_v23 = vld [vmem:[%s2098_s4 + $0x90] ss:$8 sps:$4 sm:$0xff]   ;;  %p1808_p13 = scmp.lt.s32.totalorder %s2245_s10, %s1806_s17 }
  0x79   : > { %662 = vmatprep.mubr.bf16.mxu1 %v1668_v12  ;;  %v1666_v19 = vld [vmem:[%s2098_s4 + $0x80] ss:$8 sps:$4 sm:$0xff]   ;;  %v1675_v24 = vld [vmem:[%s2098_s4 + $0x24] ss:$8 sps:$4 sm:$0xff]   ;;  %v1681_v28 = vld [vmem:[%s2098_s4 + $0x34] ss:$8 sps:$4 sm:$0xff]   ;;  %p1804_p6 = pneg %p1803_p2 }
  0x7a   : > { %v1677_v25 = vld [vmem:[%s2098_s4 + $0xa4] ss:$8 sps:$4 sm:$0xff]   ;;  %v1679_v26 = vld [vmem:[%s2098_s4 + $0x20] ss:$8 sps:$4 sm:$0xff]   ;;  %v1683_v29 = vld [vmem:[%s2098_s4 + $0xb4] ss:$8 sps:$4 sm:$0xff]  }
  0x7b   : > { %1455 = vmatpush3.bf16.msra.mxu0 %v1652_v5  ;;  %1572 = vmatpush3.bf16.msra.mxu1 %v1652_v5  ;;  %v1680_v27 = vld [vmem:[%s2098_s4 + $0xa0] ss:$8 sps:$4 sm:$0xff]   ;;  %v1685_v30 = vld [vmem:[%s2098_s4 + $0x30] ss:$8 sps:$4 sm:$0xff]   ;;  %v1687_v32 = vld [vmem:[%s2098_s4 + $0x44] ss:$8 sps:$4 sm:$0xff]  }
  0x7c   : > { %1456 = vmatprep.subr.bf16.mxu0 %v1653_v6  ;;  %1565 = vmatprep.subr.bf16.mxu1 %v1653_v6  ;;  %v1686_v31 = vld [vmem:[%s2098_s4 + $0xb0] ss:$8 sps:$4 sm:$0xff]   ;;  %v1689_v33 = vld [vmem:[%s2098_s4 + $0xc4] ss:$8 sps:$4 sm:$0xff]   ;;  %v1691_v34 = vld [vmem:[%s2098_s4 + $0x40] ss:$8 sps:$4 sm:$0xff]  }
  0x7d   : > { %v1692_v35 = vld [vmem:[%s2098_s4 + $0xc0] ss:$8 sps:$4 sm:$0xff]   ;;  %v1693_v36 = vld [vmem:[%s2098_s4 + $0x54] ss:$8 sps:$4 sm:$0xff]   ;;  %v1697_v38 = vld [vmem:[%s2098_s4 + $0x50] ss:$8 sps:$4 sm:$0xff]  }
  0x7e   : > { %v1695_v37 = vld [vmem:[%s2098_s4 + $0xd4] ss:$8 sps:$4 sm:$0xff]   ;;  %v1698_v39 = vld [vmem:[%s2098_s4 + $0xd0] ss:$8 sps:$4 sm:$0xff]   ;;  %v1699_v40 = vld [vmem:[%s2098_s4 + $0x64] ss:$8 sps:$4 sm:$0xff]  }
  0x7f   : > { %1457 = vmatpush3.bf16.msra.mxu0 %v1654_v7  ;;  %1573 = vmatpush3.bf16.msra.mxu1 %v1654_v7  ;;  %v1701_v41 = vld [vmem:[%s2098_s4 + $0xe4] ss:$8 sps:$4 sm:$0xff]   ;;  %v1703_v42 = vld [vmem:[%s2098_s4 + $0x60] ss:$8 sps:$4 sm:$0xff]   ;;  %v1705_v44 = vld [vmem:[%s2098_s4 + $0x74] ss:$8 sps:$4 sm:$0xff]  }
  0x80   : > { %1458 = vmatprep.subr.bf16.mxu0 %v1655_v8  ;;  %1566 = vmatprep.subr.bf16.mxu1 %v1655_v8  ;;  %v1704_v43 = vld [vmem:[%s2098_s4 + $0xe0] ss:$8 sps:$4 sm:$0xff]   ;;  %v1707_v45 = vld [vmem:[%s2098_s4 + $0xf4] ss:$8 sps:$4 sm:$0xff]   ;;  %v1709_v46 = vld [vmem:[%s2098_s4 + $0x70] ss:$8 sps:$4 sm:$0xff]  }
  0x81   : > { %v1710_v47 = vld [vmem:[%s2098_s4 + $0xf0] ss:$8 sps:$4 sm:$0xff]   ;;  %s1807_s11 = scalar_lea.vmem %s1806_s17, 4096 }
  0x82   : > { %v2150_v54 = vld [vmem:[%s2109_s7] sm:$0xff]  ;;  %v2153_v55 = vld [vmem:[%s2109_s7 + $0x8] sm:$0xff]  ;;  %p1809_p3 = scmp.lt.s32.totalorder %s1807_s11, %s1801_s22 }
  0x83   : > { %1459 = vmatpush3.bf16.msra.mxu0 %v1656_v9  ;;  %1574 = vmatpush3.bf16.msra.mxu1 %v1656_v9  ;;  %v738_v56 = vrot.slane %v2150_v54, %v2147_v53  ;;  %v787_v57 = vrot.slane %v2153_v55, %v2147_v53 }
  0x84   : > { %1460 = vmatprep.subr.bf16.mxu0 %v1657_v10  ;;  %1567 = vmatprep.subr.bf16.mxu1 %v1657_v10  ;;  %p1810_p1 = por %p1809_p3, %p1808_p13 }
  0x85   : > { %v754_v58 = vrot.slane %v738_v56, %v2147_v53  ;;  %v803_v60 = vrot.slane %v787_v57, %v2147_v53  ;;  %v746_v1 = vcombine.high %v738_v56, %v738_v56  ;;  %v795_v2 = vcombine.high %v787_v57, %v787_v57 }
  0x86   : > { %p1811_p4 = pnand %p1810_p1, %p1804_p6 }
  0x87   : > { %1461 = vmatpush3.bf16.msra.mxu0 %v1658_v13  ;;  %1575 = vmatpush3.bf16.msra.mxu1 %v1658_v13  ;;  %v832_v4 = vrot.slane %v754_v58, %v2160_v59  ;;  %v864_v6 = vrot.slane %v803_v60, %v2160_v59  ;;  %v2167_v13 = vrot.slane %v746_v1, %v2147_v53 }
  0x88   : > { %1462 = vmatprep.subr.bf16.mxu0 %v1659_v14  ;;  %1568 = vmatprep.subr.bf16.mxu1 %v1659_v14  ;;  %v2170_v14 = vrot.slane %v795_v2, %v2147_v53 }
  0x8b   : > { %1463 = vmatpush3.bf16.msra.mxu0 %v1660_v15  ;;  %1576 = vmatpush3.bf16.msra.mxu1 %v1660_v15 }
  0x8c   : > { %1464 = vmatprep.subr.bf16.mxu0 %v1661_v16  ;;  %1569 = vmatprep.subr.bf16.mxu1 %v1661_v16 }
  0x8f   : > { %1465 = vmatpush3.bf16.msra.mxu0 %v1662_v17  ;;  %1577 = vmatpush3.bf16.msra.mxu1 %v1662_v17 }
  0x92   : > { %599 = vmatmul.mubr.bf16.vlgmr.msra.gmra.mrb[0].mxu0 %v1663_v18  ;;  %663 = vmatmul.mubr.bf16.vlgmr.msra.gmra.mrb[0].mxu1 %v1666_v19 }
  0x93   : > { %606 = vmatprep.mubr.bf16.mxu0 %v1669_v20  ;;  %670 = vmatprep.mubr.bf16.mxu1 %v1671_v21 }
  0x9a   : > { %607 = vmatmul.mubr.bf16.gmra.mrb[4].mxu0 %v1673_v22  ;;  %671 = vmatmul.mubr.bf16.gmra.mrb[4].mxu1 %v1674_v23 }
  0x9b   : > { %614 = vmatprep.mubr.bf16.mxu0 %v1675_v24  ;;  %678 = vmatprep.mubr.bf16.mxu1 %v1677_v25 }
  0xa2   : > { %615 = vmatmul.mubr.bf16.gmra.mrb[8].mxu0 %v1679_v26  ;;  %679 = vmatmul.mubr.bf16.gmra.mrb[8].mxu1 %v1680_v27  ;;  %v836_v26 = vrot.slane %v2167_v13, %v2160_v59 }
  0xa3   : > { %622 = vmatprep.mubr.bf16.mxu0 %v1681_v28  ;;  %686 = vmatprep.mubr.bf16.mxu1 %v1683_v29  ;;  %v868_v28 = vrot.slane %v2170_v14, %v2160_v59 }
  0xaa   : > { %623 = vmatmul.mubr.bf16.gmra.mrb[12].mxu0 %v1685_v30  ;;  %687 = vmatmul.mubr.bf16.gmra.mrb[12].mxu1 %v1686_v31 }
  0xab   : > { %630 = vmatprep.mubr.bf16.mxu0 %v1687_v32  ;;  %694 = vmatprep.mubr.bf16.mxu1 %v1689_v33 }
  0xb2   : > { %631 = vmatmul.mubr.bf16.gmra.mrb[16].mxu0 %v1691_v34  ;;  %695 = vmatmul.mubr.bf16.gmra.mrb[16].mxu1 %v1692_v35  ;;  %v776_v35 = vcombine.high %v754_v58, %v754_v58 }
  0xb3   : > { %638 = vmatprep.mubr.bf16.mxu0 %v1693_v36  ;;  %702 = vmatprep.mubr.bf16.mxu1 %v1695_v37  ;;  %v825_v36 = vcombine.high %v803_v60, %v803_v60 }
  0xb4   : > { %v840_v48 = vrot.slane %v776_v35, %v2160_v59 }
  0xb5   : > { %v872_v50 = vrot.slane %v825_v36, %v2160_v59 }
  0xba   : > { %639 = vmatmul.mubr.bf16.gmra.mrb[20].mxu0 %v1697_v38  ;;  %703 = vmatmul.mubr.bf16.gmra.mrb[20].mxu1 %v1698_v39 }
  0xbb   : > { %646 = vmatprep.mubr.bf16.mxu0 %v1699_v40  ;;  %710 = vmatprep.mubr.bf16.mxu1 %v1701_v41 }
  0xc2   : > { %647 = vmatmul.mubr.bf16.gmra.mrb[24].mxu0 %v1703_v42  ;;  %711 = vmatmul.mubr.bf16.gmra.mrb[24].mxu1 %v1704_v43 }
  0xc3   : > { %654 = vmatprep.mubr.bf16.mxu0 %v1705_v44  ;;  %718 = vmatprep.mubr.bf16.mxu1 %v1707_v45 }
  0xca   : > { %655 = vmatmul.mubr.bf16.gmra.mrb[28].mxu0 %v1709_v46  ;;  %719 = vmatmul.mubr.bf16.gmra.mrb[28].mxu1 %v1710_v47 }
 0x165   : > { %v1466_v61 = vpop.f32.mrb[0].mxu0  ;;  %v1514_v62 = vpop.f32.mrb[0].mxu1 }
 0x166   : > { %v1467_v63 = vpop.f32.mrb[1].mxu0  ;;  %v1515_v0 = vpop.f32.mrb[1].mxu1 }
 0x167   : > { %v1468_v3 = vadd.f32 %v1467_v63, %v1466_v61  ;;  %v1516_v5 = vadd.f32 %v1515_v0, %v1514_v62  ;;  %v1469_v7 = vpop.f32.mrb[2].mxu0  ;;  %v1517_v8 = vpop.f32.mrb[2].mxu1  ;;  %v778_v61 = vcombine.high %v2167_v13, %v2167_v13  ;;  %v827_v62 = vcombine.high %v2170_v14, %v2170_v14 }
 0x168   : > { %v1470_v9 = vpop.f32.mrb[3].mxu0  ;;  %v1518_v10 = vpop.f32.mrb[3].mxu1  ;;  %v731_v63 = vcombine.high %v2150_v54, %v2150_v54  ;;  %v780_v0 = vcombine.high %v2153_v55, %v2153_v55 }
 0x169   : > { %v1471_v11 = vadd.f32 %v1470_v9, %v1469_v7  ;;  %v1519_v12 = vadd.f32 %v1518_v10, %v1517_v8  ;;  %v909_v15 = vadd.f32 %v1468_v3, %v832_v4  ;;  %v925_v16 = vadd.f32 %v1516_v5, %v864_v6 }
 0x16a   : > { %v844_v13 = vrot.slane %v778_v61, %v2160_v59  ;;  %v876_v14 = vrot.slane %v827_v62, %v2160_v59 }
 0x16b   : > { %v910_v17 = vadd.f32 %v1471_v11, %v832_v4  ;;  %v926_v18 = vadd.f32 %v1519_v12, %v864_v6  ;;  %v745_v11 = vrot.slane %v731_v63, %v2147_v53  ;;  %v794_v12 = vrot.slane %v780_v0, %v2147_v53 }
 0x16d   : > { %v1358_v19 = vpack.c.bf16 %v910_v17, %v909_v15  ;;  %v1398_v20 = vpack.c.bf16 %v926_v18, %v925_v16  ;;  %v1472_v21 = vpop.f32.mrb[4].mxu0  ;;  %v1520_v22 = vpop.f32.mrb[4].mxu1 }
 0x16e   : > { %v1473_v23 = vpop.f32.mrb[5].mxu0  ;;  %v1521_v24 = vpop.f32.mrb[5].mxu1 }
 0x16f   : > { %1359 = vst [vmem:[%s2172_s9] sm:$0xff] %v1358_v19   ;;  %1442 = vst [vmem:[%s2172_s9 + $0x40] sm:$0xff] %v1398_v20   ;;  %v1474_v25 = vadd.f32 %v1473_v23, %v1472_v21  ;;  %v1522_v27 = vadd.f32 %v1521_v24, %v1520_v22  ;;  %v1475_v29 = vpop.f32.mrb[6].mxu0  ;;  %v1523_v30 = vpop.f32.mrb[6].mxu1  ;;  %v2199_v21 = vrot.slane %v745_v11, %v2147_v53 }
 0x170   : > { %v1476_v31 = vpop.f32.mrb[7].mxu0  ;;  %v1524_v32 = vpop.f32.mrb[7].mxu1  ;;  %v2202_v22 = vrot.slane %v794_v12, %v2147_v53 }
 0x171   : > { %v1477_v33 = vadd.f32 %v1476_v31, %v1475_v29  ;;  %v1525_v34 = vadd.f32 %v1524_v32, %v1523_v30  ;;  %v911_v37 = vadd.f32 %v1474_v25, %v836_v26  ;;  %v927_v38 = vadd.f32 %v1522_v27, %v868_v28 }
 0x172   : > { %v848_v36 = vrot.slane %v2199_v21, %v2160_v59 }
 0x173   : > { %v912_v39 = vadd.f32 %v1477_v33, %v836_v26  ;;  %v928_v40 = vadd.f32 %v1525_v34, %v868_v28  ;;  %v747_v33 = vcombine.high %v745_v11, %v745_v11  ;;  %v796_v34 = vcombine.high %v794_v12, %v794_v12 }
 0x175   : > { %v1363_v41 = vpack.c.bf16 %v912_v39, %v911_v37  ;;  %v1403_v42 = vpack.c.bf16 %v928_v40, %v927_v38  ;;  %v1478_v43 = vpop.f32.mrb[8].mxu0  ;;  %v1526_v44 = vpop.f32.mrb[8].mxu1  ;;  %v880_v38 = vrot.slane %v2202_v22, %v2160_v59 }
 0x176   : > { %v1479_v45 = vpop.f32.mrb[9].mxu0  ;;  %v1527_v46 = vpop.f32.mrb[9].mxu1 }
 0x177   : > { %1435 = vst [vmem:[%s2172_s9 + $0x8] sm:$0xff] %v1363_v41   ;;  %1443 = vst [vmem:[%s2172_s9 + $0x48] sm:$0xff] %v1403_v42   ;;  %v1480_v47 = vadd.f32 %v1479_v45, %v1478_v43  ;;  %v1528_v49 = vadd.f32 %v1527_v46, %v1526_v44  ;;  %v1481_v51 = vpop.f32.mrb[10].mxu0  ;;  %v1529_v52 = vpop.f32.mrb[10].mxu1  ;;  %v2211_v45 = vrot.slane %v747_v33, %v2147_v53 }
 0x178   : > { %v1482_v56 = vpop.f32.mrb[11].mxu0  ;;  %v1530_v57 = vpop.f32.mrb[11].mxu1  ;;  %v2214_v46 = vrot.slane %v796_v34, %v2147_v53 }
 0x179   : > { %v1483_v58 = vadd.f32 %v1482_v56, %v1481_v51  ;;  %v1531_v60 = vadd.f32 %v1530_v57, %v1529_v52  ;;  %v913_v1 = vadd.f32 %v1480_v47, %v840_v48  ;;  %v929_v2 = vadd.f32 %v1528_v49, %v872_v50 }
 0x17a   : > { %v852_v62 = vrot.slane %v2211_v45, %v2160_v59  ;;  %v884_v53 = vrot.slane %v2214_v46, %v2160_v59 }
 0x17b   : > { %v914_v3 = vadd.f32 %v1483_v58, %v840_v48  ;;  %v930_v4 = vadd.f32 %v1531_v60, %v872_v50 }
 0x17d   : > { %v1368_v5 = vpack.c.bf16 %v914_v3, %v913_v1  ;;  %v1408_v6 = vpack.c.bf16 %v930_v4, %v929_v2  ;;  %v1484_v7 = vpop.f32.mrb[12].mxu0  ;;  %v1532_v8 = vpop.f32.mrb[12].mxu1 }
 0x17e   : > { %v1485_v9 = vpop.f32.mrb[13].mxu0  ;;  %v1533_v10 = vpop.f32.mrb[13].mxu1 }
 0x17f   : > { %1436 = vst [vmem:[%s2172_s9 + $0x10] sm:$0xff] %v1368_v5   ;;  %1444 = vst [vmem:[%s2172_s9 + $0x50] sm:$0xff] %v1408_v6   ;;  %v1486_v54 = vadd.f32 %v1485_v9, %v1484_v7  ;;  %v1534_v55 = vadd.f32 %v1533_v10, %v1532_v8  ;;  %v1487_v15 = vpop.f32.mrb[14].mxu0  ;;  %v1535_v16 = vpop.f32.mrb[14].mxu1  ;;  %v777_v6 = vcombine.high %v2199_v21, %v2199_v21 }
 0x180   : > { %v1488_v17 = vpop.f32.mrb[15].mxu0  ;;  %v1536_v18 = vpop.f32.mrb[15].mxu1  ;;  %v826_v7 = vcombine.high %v2202_v22, %v2202_v22 }
 0x181   : > { %v1489_v19 = vadd.f32 %v1488_v17, %v1487_v15  ;;  %v1537_v20 = vadd.f32 %v1536_v18, %v1535_v16  ;;  %v915_v23 = vadd.f32 %v1486_v54, %v844_v13  ;;  %v931_v24 = vadd.f32 %v1534_v55, %v876_v14 }
 0x182   : > { %v856_v17 = vrot.slane %v777_v6, %v2160_v59 }
 0x183   : > { %v916_v25 = vadd.f32 %v1489_v19, %v844_v13  ;;  %v932_v26 = vadd.f32 %v1537_v20, %v876_v14  ;;  %v888_v19 = vrot.slane %v826_v7, %v2160_v59 }
 0x185   : > { %v1373_v27 = vpack.c.bf16 %v916_v25, %v915_v23  ;;  %v1413_v28 = vpack.c.bf16 %v932_v26, %v931_v24  ;;  %v1490_v29 = vpop.f32.mrb[16].mxu0  ;;  %v1538_v30 = vpop.f32.mrb[16].mxu1  ;;  %v779_v26 = vcombine.high %v2211_v45, %v2211_v45 }
 0x186   : > { %v1491_v31 = vpop.f32.mrb[17].mxu0  ;;  %v1539_v32 = vpop.f32.mrb[17].mxu1 }
 0x187   : > { %1437 = vst [vmem:[%s2172_s9 + $0x18] sm:$0xff] %v1373_v27   ;;  %1445 = vst [vmem:[%s2172_s9 + $0x58] sm:$0xff] %v1413_v28   ;;  %v1492_v35 = vadd.f32 %v1491_v31, %v1490_v29  ;;  %v1540_v37 = vadd.f32 %v1539_v32, %v1538_v30  ;;  %v1493_v39 = vpop.f32.mrb[18].mxu0  ;;  %v1541_v40 = vpop.f32.mrb[18].mxu1  ;;  %v828_v27 = vcombine.high %v2214_v46, %v2214_v46 }
 0x188   : > { %v1494_v41 = vpop.f32.mrb[19].mxu0  ;;  %v1542_v42 = vpop.f32.mrb[19].mxu1 }
 0x189   : > { %v1495_v43 = vadd.f32 %v1494_v41, %v1493_v39  ;;  %v1543_v44 = vadd.f32 %v1542_v42, %v1541_v40  ;;  %v917_v47 = vadd.f32 %v1492_v35, %v848_v36  ;;  %v933_v48 = vadd.f32 %v1540_v37, %v880_v38 }
 0x18a   : > { %v860_v39 = vrot.slane %v779_v26, %v2160_v59  ;;  %v892_v41 = vrot.slane %v828_v27, %v2160_v59 }
 0x18b   : > { %v918_v49 = vadd.f32 %v1495_v43, %v848_v36  ;;  %v934_v50 = vadd.f32 %v1543_v44, %v880_v38 }
 0x18d   : > { %v1378_v51 = vpack.c.bf16 %v918_v49, %v917_v47  ;;  %v1418_v52 = vpack.c.bf16 %v934_v50, %v933_v48  ;;  %v1496_v56 = vpop.f32.mrb[20].mxu0  ;;  %v1544_v57 = vpop.f32.mrb[20].mxu1 }
 0x18e   : > { %v1497_v58 = vpop.f32.mrb[21].mxu0  ;;  %v1545_v60 = vpop.f32.mrb[21].mxu1 }
 0x18f   : > { %1438 = vst [vmem:[%s2172_s9 + $0x20] sm:$0xff] %v1378_v51   ;;  %1446 = vst [vmem:[%s2172_s9 + $0x60] sm:$0xff] %v1418_v52   ;;  %v1498_v61 = vadd.f32 %v1497_v58, %v1496_v56  ;;  %v1546_v63 = vadd.f32 %v1545_v60, %v1544_v57  ;;  %v1499_v0 = vpop.f32.mrb[22].mxu0  ;;  %v1547_v1 = vpop.f32.mrb[22].mxu1 }
 0x190   : > { %v1500_v2 = vpop.f32.mrb[23].mxu0  ;;  %v1548_v3 = vpop.f32.mrb[23].mxu1 }
 0x191   : > { %v1501_v4 = vadd.f32 %v1500_v2, %v1499_v0  ;;  %v1549_v5 = vadd.f32 %v1548_v3, %v1547_v1  ;;  %v919_v8 = vadd.f32 %v1498_v61, %v852_v62  ;;  %v935_v9 = vadd.f32 %v1546_v63, %v884_v53 }
 0x193   : > { %v920_v10 = vadd.f32 %v1501_v4, %v852_v62  ;;  %v936_v11 = vadd.f32 %v1549_v5, %v884_v53 }
 0x195   : > { %v1383_v12 = vpack.c.bf16 %v920_v10, %v919_v8  ;;  %v1423_v54 = vpack.c.bf16 %v936_v11, %v935_v9  ;;  %v1502_v13 = vpop.f32.mrb[24].mxu0  ;;  %v1550_v55 = vpop.f32.mrb[24].mxu1 }
 0x196   : > { %v1503_v14 = vpop.f32.mrb[25].mxu0  ;;  %v1551_v15 = vpop.f32.mrb[25].mxu1 }
 0x197   : > { %1439 = vst [vmem:[%s2172_s9 + $0x28] sm:$0xff] %v1383_v12   ;;  %1447 = vst [vmem:[%s2172_s9 + $0x68] sm:$0xff] %v1423_v54   ;;  %v1504_v16 = vadd.f32 %v1503_v14, %v1502_v13  ;;  %v1552_v18 = vadd.f32 %v1551_v15, %v1550_v55  ;;  %v1505_v20 = vpop.f32.mrb[26].mxu0  ;;  %v1553_v21 = vpop.f32.mrb[26].mxu1 }
 0x198   : > { %v1506_v22 = vpop.f32.mrb[27].mxu0  ;;  %v1554_v23 = vpop.f32.mrb[27].mxu1 }
 0x199   : > { %v1507_v24 = vadd.f32 %v1506_v22, %v1505_v20  ;;  %v1555_v25 = vadd.f32 %v1554_v23, %v1553_v21  ;;  %v921_v28 = vadd.f32 %v1504_v16, %v856_v17  ;;  %v937_v29 = vadd.f32 %v1552_v18, %v888_v19 }
 0x19b   : > { %v922_v30 = vadd.f32 %v1507_v24, %v856_v17  ;;  %v938_v31 = vadd.f32 %v1555_v25, %v888_v19 }
 0x19d   : > { %v1388_v32 = vpack.c.bf16 %v922_v30, %v921_v28  ;;  %v1428_v33 = vpack.c.bf16 %v938_v31, %v937_v29  ;;  %v1508_v34 = vpop.f32.mrb[28].mxu0  ;;  %v1556_v35 = vpop.f32.mrb[28].mxu1 }
 0x19e   : > { %v1509_v36 = vpop.f32.mrb[29].mxu0  ;;  %v1557_v37 = vpop.f32.mrb[29].mxu1 }
 0x19f   : > { %1440 = vst [vmem:[%s2172_s9 + $0x30] sm:$0xff] %v1388_v32   ;;  %1448 = vst [vmem:[%s2172_s9 + $0x70] sm:$0xff] %v1428_v33   ;;  %v1510_v38 = vadd.f32 %v1509_v36, %v1508_v34  ;;  %v1558_v40 = vadd.f32 %v1557_v37, %v1556_v35  ;;  %v1511_v42 = vpop.f32.mrb[30].mxu0  ;;  %v1559_v43 = vpop.f32.mrb[30].mxu1 }
 0x1a0   : > { %v1512_v44 = vpop.f32.mrb[31].mxu0  ;;  %v1560_v45 = vpop.f32.mrb[31].mxu1 }
 0x1a1   : > { %v1513_v46 = vadd.f32 %v1512_v44, %v1511_v42  ;;  %v1561_v47 = vadd.f32 %v1560_v45, %v1559_v43  ;;  %v923_v48 = vadd.f32 %v1510_v38, %v860_v39  ;;  %v939_v49 = vadd.f32 %v1558_v40, %v892_v41 }
 0x1a3   : > { %v924_v50 = vadd.f32 %v1513_v46, %v860_v39  ;;  %v940_v51 = vadd.f32 %v1561_v47, %v892_v41 }
 0x1a5   : > { %v1393_v59 = vpack.c.bf16 %v924_v50, %v923_v48  ;;  %v1433_v52 = vpack.c.bf16 %v940_v51, %v939_v49 }
 0x1a7   : > { %1441 = vst [vmem:[%s2172_s9 + $0x38] sm:$0xff] %v1393_v59   ;;  %1449 = vst [vmem:[%s2172_s9 + $0x78] sm:$0xff] %v1433_v52  }
 0x1a8   : > { %1814 = shalt.err (!%p1811_p4)
}
 0x1a9   : > { %s1815_s20 = scalar_lea.hbm %s2243_s30, 2048  ;;  %s1819_s4 = scalar_lea.hbm %s2294_s3, 4096 }
 0x1aa   : > { %p1816_p11 = scmp.ne.s32.totalorder %s2243_s30, %s1815_s20  ;;  %p1820_p5 = scmp.lt.u32.totalorder %s2243_s30, %s2294_s3 }
 0x1ab   : > { %p1821_p0 = scmp.lt.u32.totalorder %s1819_s4, %s1815_s20  ;;  %p1823_p9 = scmp.lt.u32.totalorder %s1815_s20, %s2243_s30 }
 0x1ac   : > { %p1817_p10 = pnand %p1816_p11, %p2311_p12 }
 0x1ad   : > { %p1822_p7 = por %p1821_p0, %p1820_p5 }
 0x1ae   : > { %p1818_p8 = pneg %p1817_p10 }
 0x1af   : > { %p1824_p2 = por %p1823_p9, %p1822_p7 }
 0x1b1   : > { %p1825_p6 = pnand %p1824_p2, %p1818_p8 }
 0x1b3   : > { %1828 = shalt.err (!%p1825_p6)
}
 0x1b4   : > { %s1886_s26 = smov 64   ;;  %s1887_s9 = smov 4  }
 0x1b5   : > { %1586 = dma.vmem_to_hbm [thread:$0]  (%p2311_p12), %s2245_s10, 2048, %s2243_s30, %s1102_s27, %s1886_s26, %s1886_s26, %s1887_s9  }
 0x1b6 PF: > { %s1130_s6 = sand.u32 1, %s1863_s12   ;;  %p2312_p13 = scmp.ne.s32.totalorder %s2303_s28, 0 }
 0x1b7   : > { %p2313_p3 = scmp.ge.s32.totalorder %s1875_s15, 2  ;;  %s1131_s29 = scalar_lea.sflag [#allocation4], %s1130_s6 }
 0x1b9   : > { %p1600_p1 = pnand %p2313_p3, %p2312_p13 }
 0x1bb   : > { %1858 = dma.done.wait (!%p1600_p1), %s1131_s29, 2048  }
 0x1bc   : > { %1860 = vsyncadd (!%p1600_p1), %s1131_s29, 4294965248  ;;  %p17_p4 = scmp.ge.s32.totalorder %s1929_s16, 4   ;;  %s2314_s12 = smov %s1867_s13 }
 0x1bd   : > { %s2315_s13 = smov %s1871_s14  ;;  %s2316_s14 = smov %s1940_s19 }
 0x1be   : > { %s2317_s15 = smov %s1929_s16  ;;  %19 = sbr.rel (!%p17_p4) target bundleno = 6 (0x6), region = 92 }
 0x1c5   :  { %1136 = vsyncpa [#allocation3], 1 }
 0x1c6   :  { %1138 = vsyncpa [#allocation3 + $0x1], 1 }
 0x1c7   :  { %1139 = vsyncpa [#allocation6], 1 }
 0x1c8   :  { %1140 = vsyncpa [#allocation4], 1 }
 0x1c9   :  { %1142 = vsyncpa [#allocation4 + $0x1], 1 }

</bundles_post_ra>
